<compile_context>
chip_gen: v6e
topology: v6e:2x2x1
jax: 0.10.0
libtpu: 0.0.40
codegen_flags: <defaults>
</compile_context>

<pallas_src>
import functools
import math

import jax
import jax.numpy as jnp
from jax.experimental import pallas as pl
from jax.experimental.pallas import tpu as pltpu


def _softplus(x):
    # Matches torch.nn.Softplus(beta=1, threshold=20):
    #   x > 20    -> x
    #   otherwise -> log(1 + exp(x))
    # One exp + one log1p per element (EUP); threshold/select stays on the VPU.
    safe = jnp.minimum(x, 20.0)
    return jnp.where(x > 20.0, x, jnp.log1p(jnp.exp(safe)))


def _mlp_kernel(x_ref, w_ref, b_ref, o_ref):
    # x_ref: (TM, C_in)    natural-layout row tile (contiguous DMA)
    # w_ref: (C_out, C_in) full weight, grid-invariant (VMEM resident)
    # b_ref: (C_out, 1)    bias column, grid-invariant
    # o_ref: (TM, C_out)   natural-layout output tile
    x_t = x_ref[...].astype(jnp.float32).T                  # (C_in, TM) lane-dense (XLU)
    h = _softplus(x_t)                                      # Softplus #1, full EUP lanes
    y = jnp.dot(w_ref[...].astype(jnp.float32), h,          # (C_out, TM) on the MXU
                preferred_element_type=jnp.float32)
    y = y + b_ref[...].astype(jnp.float32)                  # bias broadcast over lanes
    z = _softplus(y)                                        # Softplus #2, lane-dense
    o_ref[...] = z.T.astype(o_ref.dtype)                    # back to (TM, C_out) for store


def _round_up(x, n):
    return ((x + n - 1) // n) * n


@functools.partial(jax.jit, static_argnames=("tile_m",))
def schulz_lerch_mlp_pallas(x, weight, bias, *, tile_m=16384):
    """x: (..., C_in); weight: (C_out, C_in); bias: (C_out,) -> (..., C_out)."""
    c_out, c_in = weight.shape
    lead = x.shape[:-1]
    m = math.prod(lead) if lead else 1

    x2 = x.reshape(m, c_in)                    # natural (M, C_in) layout, no transpose
    b_col = bias.reshape(c_out, 1)             # (C_out, 1)

    # Row tile: multiple of 128; clamp to ceil(M/2) so the parallel axis has
    # >= 2 steps whenever M allows (keeps both v7x TensorCores busy); tiny
    # inputs collapse to a single 128-row block.
    tm_cap = _round_up(-(-m // 2), 128)
    tm = max(128, min(_round_up(tile_m, 128), tm_cap))
    grid = (pl.cdiv(m, tm),)

    cost = pl.CostEstimate(
        flops=2 * m * c_in * c_out,
        transcendentals=2 * m * (c_in + c_out),              # exp + log1p per element
        bytes_accessed=4 * m * (c_in + c_out) + 4 * c_out * (c_in + 1),
    )

    out = pl.pallas_call(
        _mlp_kernel,
        out_shape=jax.ShapeDtypeStruct((m, c_out), x.dtype),
        grid_spec=pltpu.PrefetchScalarGridSpec(
            num_scalar_prefetch=0,
            grid=grid,
            in_specs=[
                pl.BlockSpec((tm, c_in), lambda i: (i, 0)),      # x row tile (natural)
                pl.BlockSpec((c_out, c_in), lambda i: (0, 0)),   # weight (invariant)
                pl.BlockSpec((c_out, 1), lambda i: (0, 0)),      # bias   (invariant)
            ],
            out_specs=pl.BlockSpec((tm, c_out), lambda i: (i, 0)),
        ),
        compiler_params=pltpu.CompilerParams(
            dimension_semantics=("parallel",),
            vmem_limit_bytes=32 * 1024 * 1024,
        ),
        cost_estimate=cost,
    )(x2, weight, b_col)

    return out.reshape(*lead, c_out)


def init_params(c_in, c_out, key):
    """Deterministic init matching nn.Linear's default U(-1/sqrt(fan_in), +)."""
    kw, kb = jax.random.split(key)
    bound = 1.0 / (c_in ** 0.5)
    weight = jax.random.uniform(kw, (c_out, c_in), jnp.float32, -bound, bound)
    bias = jax.random.uniform(kb, (c_out,), jnp.float32, -bound, bound)
    return weight, bias


def _reference(x, weight, bias):
    h = jax.nn.softplus(x)
    y = h @ weight.T + bias
    return jax.nn.softplus(y)


if __name__ == "__main__":
    key = jax.random.PRNGKey(0)
    k1, k2, k3, k4 = jax.random.split(key, 4)

    # mode="bqn": in_channels=48 -> out_channels=24.
    w_bqn, b_bqn = init_params(48, 24, k1)
    x = jax.random.normal(k2, (2, 8, 48), dtype=jnp.float32)
    out = jax.block_until_ready(schulz_lerch_mlp_pallas(x, w_bqn, b_bqn))
    ref = _reference(x, w_bqn, b_bqn)
    assert out.shape == (2, 8, 24)
    assert jnp.allclose(out, ref, atol=1e-5, rtol=1e-5), "mismatch vs reference (bqn)"

    # Multi-step grid + partial (masked) last tile: 300 rows with 128-row tiles.
    x2 = jax.random.normal(k3, (5, 60, 48), dtype=jnp.float32)
    out2 = jax.block_until_ready(schulz_lerch_mlp_pallas(x2, w_bqn, b_bqn, tile_m=128))
    ref2 = _reference(x2, w_bqn, b_bqn)
    assert out2.shape == (5, 60, 24)
    assert jnp.allclose(out2, ref2, atol=1e-5, rtol=1e-5), "mismatch vs reference (tail)"

    # Non-"bqn" mode: in_channels=64 -> out_channels=32.
    w_o, b_o = init_params(64, 32, k4)
    x3 = jax.random.normal(k2, (2, 8, 64), dtype=jnp.float32)
    out3 = jax.block_until_ready(schulz_lerch_mlp_pallas(x3, w_o, b_o))
    ref3 = _reference(x3, w_o, b_o)
    assert out3.shape == (2, 8, 32)
    assert jnp.allclose(out3, ref3, atol=1e-5, rtol=1e-5), "mismatch vs reference (other)"

    print("KERNEL_OK")
</pallas_src>

<mosaic_0001>
module attributes {stable_mosaic.version = 11 : i64} {
  func.func @_mlp_kernel(%arg0: i32, %arg1: memref<128x48xf32, #tpu.memory_space<vmem>>, %arg2: memref<24x48xf32, #tpu.memory_space<vmem>>, %arg3: memref<24x1xf32, #tpu.memory_space<vmem>>, %arg4: memref<128x24xf32, #tpu.memory_space<vmem>>) attributes {dimension_semantics = [#tpu.dimension_semantics<parallel>], iteration_bounds = array<i64: 1>, scalar_prefetch = 0 : i64, scratch_operands = 0 : i64, tpu.core_type = #tpu.core_type<tc>, window_params = [{transform_indices = @transform_0, window_bounds = array<i64: 128, 48>}, {pipeline_mode = #tpu.pipeline_mode<synchronous>, transform_indices = @transform_1, window_bounds = array<i64: 24, 48>}, {pipeline_mode = #tpu.pipeline_mode<synchronous>, transform_indices = @transform_2, window_bounds = array<i64: 24, 1>}, {transform_indices = @transform_3, window_bounds = array<i64: 128, 24>}]} {
    %c0 = arith.constant 0 : index
    %c0_0 = arith.constant 0 : index
    %0 = vector.load %arg1[%c0, %c0_0] : memref<128x48xf32, #tpu.memory_space<vmem>>, vector<128x48xf32>
    %1 = tpu.transpose %0, [1, 0] : vector<128x48xf32> -> vector<48x128xf32>
    %cst = arith.constant 2.000000e+01 : f32
    %2 = vector.broadcast %cst : f32 to vector<48x128xf32>
    %3 = arith.minimumf %1, %2 : vector<48x128xf32>
    %cst_1 = arith.constant 2.000000e+01 : f32
    %4 = vector.broadcast %cst_1 : f32 to vector<48x128xf32>
    %5 = arith.cmpf ogt, %1, %4 : vector<48x128xf32>
    %6 = math.exp %3 : vector<48x128xf32>
    %7 = math.log1p %6 : vector<48x128xf32>
    %8 = arith.select %5, %1, %7 : vector<48x128xi1>, vector<48x128xf32>
    %c0_2 = arith.constant 0 : index
    %c0_3 = arith.constant 0 : index
    %9 = vector.load %arg2[%c0_2, %c0_3] : memref<24x48xf32, #tpu.memory_space<vmem>>, vector<24x48xf32>
    %cst_4 = arith.constant dense<0.000000e+00> : vector<24x128xf32>
    %10 = tpu.matmul %9, %8, %cst_4 {dimension_numbers = #tpu.dot_dimension_numbers<[1], [0], [0], [1], [0, 0, 1, 1], [], []>} : vector<24x48xf32>, vector<48x128xf32>, vector<24x128xf32> -> vector<24x128xf32>
    %c0_5 = arith.constant 0 : index
    %c0_6 = arith.constant 0 : index
    %11 = vector.load %arg3[%c0_5, %c0_6] : memref<24x1xf32, #tpu.memory_space<vmem>>, vector<24x1xf32>
    %12 = vector.broadcast %11 : vector<24x1xf32> to vector<24x128xf32>
    %13 = arith.addf %10, %12 : vector<24x128xf32>
    %cst_7 = arith.constant 2.000000e+01 : f32
    %14 = vector.broadcast %cst_7 : f32 to vector<24x128xf32>
    %15 = arith.minimumf %13, %14 : vector<24x128xf32>
    %cst_8 = arith.constant 2.000000e+01 : f32
    %16 = vector.broadcast %cst_8 : f32 to vector<24x128xf32>
    %17 = arith.cmpf ogt, %13, %16 : vector<24x128xf32>
    %18 = math.exp %15 : vector<24x128xf32>
    %19 = math.log1p %18 : vector<24x128xf32>
    %20 = arith.select %17, %13, %19 : vector<24x128xi1>, vector<24x128xf32>
    %21 = tpu.transpose %20, [1, 0] : vector<24x128xf32> -> vector<128x24xf32>
    %c0_9 = arith.constant 0 : index
    %c0_10 = arith.constant 0 : index
    %22 = vector.load %arg4[%c0_9, %c0_10] : memref<128x24xf32, #tpu.memory_space<vmem>>, vector<128x24xf32>
    tpu.vector_store %arg4[%c0_9, %c0_10], %21 {strides = array<i32>} : memref<128x24xf32, #tpu.memory_space<vmem>>, vector<128x24xf32>,
    return
  }
  func.func @transform_0(%arg0: i32) -> (i32, i32) {
    %c0_i32 = arith.constant 0 : i32
    %c0_i32_0 = arith.constant 0 : i32
    return %arg0, %c0_i32 : i32, i32
  }
  func.func @transform_1(%arg0: i32) -> (i32, i32) {
    %c0_i32 = arith.constant 0 : i32
    %c0_i32_0 = arith.constant 0 : i32
    %c0_i32_1 = arith.constant 0 : i32
    return %c0_i32, %c0_i32_0 : i32, i32
  }
  func.func @transform_2(%arg0: i32) -> (i32, i32) {
    %c0_i32 = arith.constant 0 : i32
    %c0_i32_0 = arith.constant 0 : i32
    %c0_i32_1 = arith.constant 0 : i32
    return %c0_i32, %c0_i32_0 : i32, i32
  }
  func.func @transform_3(%arg0: i32) -> (i32, i32) {
    %c0_i32 = arith.constant 0 : i32
    %c0_i32_0 = arith.constant 0 : i32
    return %arg0, %c0_i32 : i32, i32
  }
}

</mosaic_0001>

<bundles_post_ra>
// kernel: schulz_lerch_mlp_pallas.1
= control target key start
LH: loop header
LB: loop body
LE: loop exit
PB: predicated region body
PF: predicated region fallthrough
CT: control target
= control target key end

     0   :  { %8 = vsyncpa [#allocation3], 0  ;;  %s679_s0 = inlined_call_operand.hbm [shape: f32[16,48], index: 0, kind: input, shape index: {}]   ;;  %s680_s1 = inlined_call_operand.vmem [shape: f32[24,48], index: 1, kind: input, shape index: {}]   ;;  %s681_s2 = inlined_call_operand.vmem [shape: f32[24,1], index: 2, kind: input, shape index: {}]   ;;  %s682_s3 = inlined_call_operand.hbm [shape: f32[16,24], index: 3, kind: output, shape index: {}]  }
   0x1   :  { %9 = vsyncpa [#allocation4], 0 }
   0x2   :  { %14 = vsyncadd [#allocation3], 1792  ;;  %s514_s12 = smov [#allocation2]  }
   0x3   :  { %s15_s13 = sshll.u32 %s514_s12, 4  ;;  %s16_s13 = int_to_ptr.vmem [resolvable:$true] %s15_s13 }
   0x4   :  { %s478_s14 = scalar_lea.vmem %s16_s13, 256  ;;  %s482_s15 = scalar_lea.vmem %s16_s13, 2048 }
   0x5   :  { %p479_p0 = scmp.ne.s32.totalorder %s16_s13, %s478_s14  ;;  %p483_p1 = scmp.lt.s32.totalorder %s16_s13, %s16_s13 }
   0x6   :  { %p484_p2 = scmp.lt.s32.totalorder %s482_s15, %s478_s14 }
   0x8   :  { %p485_p3 = por %p484_p2, %p483_p1 }
   0xa   :  { %p486_p4 = pnand %p485_p3, %p479_p0 }
   0xc   :  { %489 = shalt.err (!%p486_p4)
}
   0xd   :  { %s515_s16 = smov 128   ;;  %s516_s17 = smov 8  }
   0xe   :  { %21 = dma.hbm_to_vmem [thread:$0]  %s679_s0, 256, %s16_s13, [#allocation3], %s515_s16, %s515_s16, %s516_s17  }
   0xf   :  { %510 = dma.done.wait [#allocation3], 2048  }
  0x10   :  { %511 = vsyncadd [#allocation3], 4294965248  ;;  %v29_v0 = vld [vmem:[#allocation2] sm:$0xff]  ;;  %v30_v1 = vld [vmem:[#allocation2 + $0x8] sm:$0xff]  ;;  %v517_v7 = vmov 0.0   ;;  %vm518_vm0 = vmmov 0  }
  0x11   :  { %45 = vxpose.xlu0.b32.start [1/16] (narrow) %v29_v0, 48  ;;  %v31_v2 = vld [vmem:[#allocation2 + $0x10] sm:$0xff]  ;;  %v32_v3 = vld [vmem:[#allocation2 + $0x18] sm:$0xff]  ;;  %v33_v4 = vld [vmem:[#allocation2 + $0x20] sm:$0xff]  ;;  %392 = vmatprep.subr.mxu0 %v517_v7  ;;  %v519_v18 = vmov 0   ;;  %vm182_vm13 = vcmask 392192  }
  0x12   :  { %v34_v5 = vld [vmem:[#allocation2 + $0x28] sm:$0xff]  ;;  %v35_v6 = vld [vmem:[#allocation2 + $0x30] sm:$0xff]  ;;  %413 = vmatprep.subr.mxu1 %v517_v7  ;;  %v36_v8 = vld [vmem:[#allocation2 + $0x38] sm:$0xff]  ;;  %404 = vmatprep.mubr.msk.f32.mxu0 %vm518_vm0, %v517_v7 }
  0x13   :  { %v37_v9 = vld [vmem:[#allocation2 + $0x40] sm:$0xff]  ;;  %v38_v10 = vld [vmem:[#allocation2 + $0x48] sm:$0xff]  ;;  %v39_v11 = vld [vmem:[#allocation2 + $0x50] sm:$0xff]  ;;  %407 = vmatprep.mubr.msk.f32.mxu1 %vm518_vm0, %v517_v7  ;;  %432 = vset.pattern.permute.xlu1 %v519_v18 }
  0x14   :  { %v40_v12 = vld [vmem:[#allocation2 + $0x58] sm:$0xff]  ;;  %v41_v13 = vld [vmem:[#allocation2 + $0x60] sm:$0xff]  ;;  %v42_v14 = vld [vmem:[#allocation2 + $0x68] sm:$0xff] }
  0x15   :  { %46 = vxpose.xlu0.b32.cont [2/16] (narrow) %v30_v1, 48  ;;  %v43_v15 = vld [vmem:[#allocation2 + $0x70] sm:$0xff]  ;;  %v44_v16 = vld [vmem:[#allocation2 + $0x78] sm:$0xff]  ;;  %v164_v17 = vld [vmem:[%s681_s2] sm:$0xff] }
  0x16   :  { %169 = vperm.xlu1 %432, %v164_v17   ;;  %v165_v19 = vld [vmem:[%s681_s2 + $0x8] sm:$0xff]  ;;  %v166_v20 = vld [vmem:[%s681_s2 + $0x10] sm:$0xff] }
  0x19   :  { %47 = vxpose.xlu0.b32.cont [3/16] (narrow) %v31_v2, 48 }
  0x1a   :  { %174 = vperm.xlu1 %432, %v165_v19  }
  0x1d   :  { %48 = vxpose.xlu0.b32.cont [4/16] (narrow) %v32_v3, 48 }
  0x1e   :  { %179 = vperm.xlu1 %432, %v166_v20  }
  0x21   :  { %49 = vxpose.xlu0.b32.cont [5/16] (narrow) %v33_v4, 48 }
  0x25   :  { %50 = vxpose.xlu0.b32.cont [6/16] (narrow) %v34_v5, 48 }
  0x29   :  { %51 = vxpose.xlu0.b32.cont [7/16] (narrow) %v35_v6, 48 }
  0x2d   :  { %52 = vxpose.xlu0.b32.cont [8/16] (narrow) %v36_v8, 48 }
  0x31   :  { %53 = vxpose.xlu0.b32.cont [9/16] (narrow) %v37_v9, 48 }
  0x35   :  { %54 = vxpose.xlu0.b32.cont [10/16] (narrow) %v38_v10, 48 }
  0x39   :  { %55 = vxpose.xlu0.b32.cont [11/16] (narrow) %v39_v11, 48 }
  0x3d   :  { %56 = vxpose.xlu0.b32.cont [12/16] (narrow) %v40_v12, 48 }
  0x41   :  { %57 = vxpose.xlu0.b32.cont [13/16] (narrow) %v41_v13, 48 }
  0x45   :  { %58 = vxpose.xlu0.b32.cont [14/16] (narrow) %v42_v14, 48 }
  0x49   :  { %59 = vxpose.xlu0.b32.cont [15/16] (narrow) %v43_v15, 48 }
  0x4d   :  { %60 = vxpose.xlu0.b32.end [16/16] (narrow) %v44_v16, 48 }
  0x76   :  { %433 = vset.pattern.permute.xlu0 %v519_v18 }
  0x8d   :  { %v562_v21 = vpop.trf.xlu0 }
  0x8e   :  { %v77_v29 = vmin.f32 %v562_v21, 20.0  ;;  %vm83_vm12 = vcmp.gt.f32.partialorder %v562_v21, 20.0 }
  0x90   :  { %v89_v35 = vmul.f32 1.442695, %v77_v29 }
  0x91   :  { %v564_v22 = vpop.trf.xlu0 }
  0x92   :  { %v78_v27 = vmin.f32 %v564_v22, 20.0  ;;  %vm84_vm11 = vcmp.gt.f32.partialorder %v564_v22, 20.0 }
  0x94   :  { %v91_v33 = vmul.f32 1.442695, %v78_v27 }
  0x95   :  { %v566_v23 = vpop.trf.xlu0 }
  0x96   :  { %v79_v24 = vmin.f32 %v566_v23, 20.0  ;;  %vm85_vm9 = vcmp.gt.f32.partialorder %v566_v23, 20.0 }
  0x98   :  { %v93_v30 = vmul.f32 1.442695, %v79_v24 }
  0x99   :  { %v569_v25 = vpop.trf.xlu0 }
  0x9a   :  { %v80_v26 = vmin.f32 %v569_v25, 20.0  ;;  %vm86_vm7 = vcmp.gt.f32.partialorder %v569_v25, 20.0 }
  0x9c   :  { %v95_v28 = vmul.f32 1.442695, %v80_v26 }
  0x9d   :  { %v574_v31 = vpop.trf.xlu0 }
  0x9e   :  { %v81_v32 = vmin.f32 %v574_v31, 20.0  ;;  %434 = vpow2.f32 %v95_v28  ;;  %vm87_vm4 = vcmp.gt.f32.partialorder %v574_v31, 20.0 }
  0x9f   :  { %436 = vpow2.f32 %v93_v30 }
  0xa0   :  { %v97_v34 = vmul.f32 1.442695, %v81_v32 }
  0xa1   :  { %v66_v36 = vpop.trf.xlu0 }
  0xa2   :  { %438 = vpow2.f32 %v97_v34  ;;  %v82_v37 = vmin.f32 %v66_v36, 20.0  ;;  %vm88_vm1 = vcmp.gt.f32.partialorder %v66_v36, 20.0 }
  0xa3   :  { %440 = vpow2.f32 %v91_v33 }
  0xa4   :  { %v99_v38 = vmul.f32 1.442695, %v82_v37  ;;  %442 = vpow2.f32 %v89_v35 }
  0xa6   :  { %444 = vpow2.f32 %v99_v38 }
  0xab   :  { %v435_v39 = vpop.eup %434 }
  0xac   :  { %v577_v40 = vpop.eup %436  ;;  %v128_v43 = vadd.f32 1.0, %v435_v39  ;;  %v131_v53 = vmul.f32 -0.5, %v435_v39  ;;  %v134_v3 = vand.u32 2147483647, %v435_v39 }
  0xad   :  { %v119_v45 = vadd.f32 1.0, %v577_v40  ;;  %v122_v55 = vmul.f32 -0.5, %v577_v40  ;;  %v125_v13 = vand.u32 2147483647, %v577_v40 }
  0xae   :  { %v132_v0 = vadd.f32 1.0, %v131_v53  ;;  %vm598_vm5 = vcmp.lt.f32.partialorder %v134_v3, 0.0004427343 }
  0xaf   :  { %v439_v41 = vpop.eup %438  ;;  %v123_v4 = vadd.f32 1.0, %v122_v55  ;;  %vm609_vm6 = vcmp.lt.f32.partialorder %v125_v13, 0.0004427343 }
  0xb0   :  { %v137_v42 = vadd.f32 1.0, %v439_v41  ;;  %v579_v44 = vpop.eup %440  ;;  %v140_v52 = vmul.f32 -0.5, %v439_v41  ;;  %v143_v61 = vand.u32 2147483647, %v439_v41  ;;  %v133_v16 = vmul.f32 %v435_v39, %v132_v0 }
  0xb1   :  { %v582_v46 = vpop.eup %442  ;;  %v110_v49 = vadd.f32 1.0, %v579_v44  ;;  %v113_v56 = vmul.f32 -0.5, %v579_v44  ;;  %v116_v24 = vand.u32 2147483647, %v579_v44  ;;  %v124_v27 = vmul.f32 %v577_v40, %v123_v4 }
  0xb2   :  { %446 = vlog2.f32 %v137_v42  ;;  %v101_v50 = vadd.f32 1.0, %v582_v46  ;;  %v141_v58 = vadd.f32 1.0, %v140_v52  ;;  %v104_v1 = vmul.f32 -0.5, %v582_v46 }
  0xb3   :  { %v445_v47 = vpop.eup %444  ;;  %448 = vlog2.f32 %v128_v43  ;;  %v114_v5 = vadd.f32 1.0, %v113_v56  ;;  %vm589_vm3 = vcmp.lt.f32.partialorder %v143_v61, 0.0004427343  ;;  %v107_v33 = vand.u32 2147483647, %v582_v46  ;;  %v162_v43 = vld [vmem:[%s680_s1 + $0x8] sm:$0xff] }
  0xb4   :  { %v146_v48 = vadd.f32 1.0, %v445_v47  ;;  %450 = vlog2.f32 %v119_v45  ;;  %v149_v51 = vmul.f32 -0.5, %v445_v47  ;;  %v152_v60 = vand.u32 2147483647, %v445_v47  ;;  %v170_v45 = vpop.permute.xlu1 %169 }
  0xb5   :  { %v142_v9 = vmul.f32 %v439_v41, %v141_v58  ;;  %v105_v29 = vadd.f32 1.0, %v104_v1  ;;  %v115_v35 = vmul.f32 %v579_v44, %v114_v5  ;;  %vm621_vm8 = vcmp.lt.f32.partialorder %v116_v24, 0.0004427343 }
  0xb6   :  { %452 = vlog2.f32 %v146_v48  ;;  %v150_v57 = vadd.f32 1.0, %v149_v51  ;;  %vm153_vm2 = vcmp.lt.f32.partialorder %v152_v60, 0.0004427343  ;;  %vm632_vm10 = vcmp.lt.f32.partialorder %v107_v33, 0.0004427343 }
  0xb7   :  { %454 = vlog2.f32 %v110_v49  ;;  %v106_v39 = vmul.f32 %v582_v46, %v105_v29 }
  0xb8   :  { %456 = vlog2.f32 %v101_v50  ;;  %v151_v8 = vmul.f32 %v445_v47, %v150_v57  ;;  %v175_v46 = vpop.permute.xlu1 %174 }
  0xbf   :  { %v447_v54 = vpop.eup %446 }
  0xc0   :  { %v449_v59 = vpop.eup %448  ;;  %v139_v63 = vmul.f32 0.6931472, %v447_v54  ;;  %v180_v54 = vpop.permute.xlu1 %179 }
  0xc1   :  { %v451_v62 = vpop.eup %450  ;;  %v130_v10 = vmul.f32 0.6931472, %v449_v59 }
  0xc2   :  { %v145_v15 = vsel %vm589_vm3, %v142_v9, %v139_v63  ;;  %v121_v17 = vmul.f32 0.6931472, %v451_v62 }
  0xc3   :  { %v453_v2 = vpop.eup %452  ;;  %v136_v26 = vsel %vm598_vm5, %v133_v16, %v130_v10  ;;  %v159_v30 = vsel %vm87_vm4, %v574_v31, %v145_v15  ;;  %vm346_vm4 = vcmask 195584  }
  0xc4   :  { %v148_v6 = vmul.f32 0.6931472, %v453_v2  ;;  %v455_v11 = vpop.eup %454  ;;  %v127_v34 = vsel %vm609_vm6, %v124_v27, %v121_v17  ;;  %v158_v31 = vsel %vm86_vm7, %v569_v25, %v136_v26 }
  0xc5   :  { %v457_v18 = vpop.eup %456  ;;  %v112_v28 = vmul.f32 0.6931472, %v455_v11  ;;  %v157_v40 = vsel %vm85_vm9, %v566_v23, %v127_v34  ;;  %v161_v23 = vld [vmem:[%s680_s1] sm:$0xff] }
  0xc6   :  { %v154_v14 = vsel %vm153_vm2, %v151_v8, %v148_v6 }
  0xc7   :  { %v160_v19 = vsel %vm88_vm1, %v66_v36, %v154_v14  ;;  %v103_v36 = vmul.f32 0.6931472, %v457_v18  ;;  %v118_v38 = vsel %vm621_vm8, %v115_v35, %v112_v28 }
  0xc8   :  { %393 = vmatpush3.msra.mxu0 %v160_v19  ;;  %419 = vmatpush3.msra.mxu1 %v160_v19  ;;  %v156_v42 = vsel %vm84_vm11, %v564_v22, %v118_v38  ;;  %v163_v22 = vld [vmem:[%s680_s1 + $0x10] sm:$0xff] }
  0xc9   :  { %394 = vmatprep.subr.mxu0 %v517_v7  ;;  %414 = vmatprep.subr.mxu1 %v517_v7  ;;  %v109_v41 = vsel %vm632_vm10, %v106_v39, %v103_v36 }
  0xca   :  { %395 = vmatpush3.msra.mxu0 %v159_v30  ;;  %420 = vmatpush3.msra.mxu1 %v159_v30  ;;  %v155_v44 = vsel %vm83_vm12, %v562_v21, %v109_v41 }
  0xcb   :  { %396 = vmatprep.subr.mxu0 %v517_v7  ;;  %415 = vmatprep.subr.mxu1 %v517_v7 }
  0xcc   :  { %397 = vmatpush3.msra.mxu0 %v158_v31  ;;  %421 = vmatpush3.msra.mxu1 %v158_v31 }
  0xcd   :  { %398 = vmatprep.subr.mxu0 %v517_v7  ;;  %416 = vmatprep.subr.mxu1 %v517_v7 }
  0xce   :  { %399 = vmatpush3.msra.mxu0 %v157_v40  ;;  %422 = vmatpush3.msra.mxu1 %v157_v40 }
  0xcf   :  { %400 = vmatprep.subr.mxu0 %v517_v7  ;;  %417 = vmatprep.subr.mxu1 %v517_v7 }
  0xd0   :  { %401 = vmatpush3.msra.mxu0 %v156_v42  ;;  %423 = vmatpush3.msra.mxu1 %v156_v42 }
  0xd1   :  { %402 = vmatprep.subr.mxu0 %v517_v7  ;;  %418 = vmatprep.subr.mxu1 %v517_v7 }
  0xd2   :  { %403 = vmatpush3.msra.mxu0 %v155_v44  ;;  %424 = vmatpush3.msra.mxu1 %v155_v44 }
  0xd3   :  { %405 = vmatmul.mubr.msk.f32.vlgmr.msra.gmra.mxu0 %vm182_vm13, %v161_v23  ;;  %408 = vmatmul.mubr.msk.f32.vlgmr.msra.gmra.mxu1 %vm182_vm13, %v162_v43 }
  0xd4   :  { %410 = vmatprep.mubr.msk.f32.mxu1 %vm518_vm0, %v517_v7 }
  0xd7   :  { %411 = vmatmul.mubr.msk.f32.gmra.mxu1 %vm182_vm13, %v163_v22 }
 0x193   :  { %v258_v47 = vpop.f32.mrf.mxu0  ;;  %v263_v48 = vpop.f32.mrf.mxu1 }
 0x194   :  { %v259_v49 = vadd.f32 %v258_v47, %v170_v45  ;;  %v264_v50 = vadd.f32 %v263_v48, %v175_v46 }
 0x195   :  { %v406_v51 = vpop.f32.mrf.mxu0  ;;  %v409_v21 = vpop.f32.mrf.mxu1 }
 0x196   :  { %v272_v52 = vmin.f32 %v259_v49, 20.0  ;;  %v273_v53 = vmin.f32 %v264_v50, 20.0  ;;  %vm275_vm15 = vcmp.gt.f32.partialorder %v259_v49, 20.0  ;;  %vm276_vm1 = vcmp.gt.f32.partialorder %v264_v50, 20.0 }
 0x197   :  { %v268_v55 = vpop.f32.mrf.mxu1 }
 0x198   :  { %v278_v56 = vmul.f32 1.442695, %v272_v52  ;;  %v280_v57 = vmul.f32 1.442695, %v273_v53  ;;  %v269_v7 = vadd.f32 %v268_v55, %v180_v54 }
 0x199   :  { %v412_v58 = vpop.f32.mrf.mxu1 }
 0x19a   :  { %458 = vpow2.f32 %v278_v56  ;;  %v274_v59 = vmin.f32 %v269_v7, 20.0  ;;  %vm277_vm3 = vcmp.gt.f32.partialorder %v269_v7, 20.0 }
 0x19b   :  { %460 = vpow2.f32 %v280_v57 }
 0x19c   :  { %v282_v60 = vmul.f32 1.442695, %v274_v59 }
 0x19e   :  { %462 = vpow2.f32 %v282_v60 }
 0x1a7   :  { %v459_v61 = vpop.eup %458 }
 0x1a8   :  { %v461_v62 = vpop.eup %460  ;;  %v284_v63 = vadd.f32 1.0, %v459_v61  ;;  %v287_v3 = vmul.f32 -0.5, %v459_v61  ;;  %v290_v6 = vand.u32 2147483647, %v459_v61 }
 0x1a9   :  { %v293_v0 = vadd.f32 1.0, %v461_v62  ;;  %v296_v4 = vmul.f32 -0.5, %v461_v62  ;;  %v299_v11 = vand.u32 2147483647, %v461_v62 }
 0x1aa   :  { %464 = vlog2.f32 %v284_v63  ;;  %v288_v5 = vadd.f32 1.0, %v287_v3  ;;  %vm291_vm14 = vcmp.lt.f32.partialorder %v290_v6, 0.0004427343 }
 0x1ab   :  { %v463_v1 = vpop.eup %462  ;;  %466 = vlog2.f32 %v293_v0  ;;  %v297_v8 = vadd.f32 1.0, %v296_v4  ;;  %vm300_vm0 = vcmp.lt.f32.partialorder %v299_v11, 0.0004427343 }
 0x1ac   :  { %v302_v2 = vadd.f32 1.0, %v463_v1  ;;  %v305_v9 = vmul.f32 -0.5, %v463_v1  ;;  %v289_v14 = vmul.f32 %v459_v61, %v288_v5  ;;  %v308_v24 = vand.u32 2147483647, %v463_v1 }
 0x1ad   :  { %v298_v17 = vmul.f32 %v461_v62, %v297_v8 }
 0x1ae   :  { %468 = vlog2.f32 %v302_v2  ;;  %v306_v18 = vadd.f32 1.0, %v305_v9  ;;  %vm309_vm2 = vcmp.lt.f32.partialorder %v308_v24, 0.0004427343 }
 0x1b0   :  { %v307_v28 = vmul.f32 %v463_v1, %v306_v18 }
 0x1b7   :  { %v465_v10 = vpop.eup %464 }
 0x1b8   :  { %v467_v12 = vpop.eup %466  ;;  %v286_v13 = vmul.f32 0.6931472, %v465_v10 }
 0x1b9   :  { %v295_v15 = vmul.f32 0.6931472, %v467_v12 }
 0x1ba   :  { %v292_v16 = vsel %vm291_vm14, %v289_v14, %v286_v13 }
 0x1bb   :  { %v469_v19 = vpop.eup %468  ;;  %v311_v20 = vsel %vm275_vm15, %v259_v49, %v292_v16  ;;  %v301_v26 = vsel %vm300_vm0, %v298_v17, %v295_v15 }
 0x1bc   :  { %314 = vxpose.xlu1.b32.start [1/3] (short) %v311_v20, 128  ;;  %v304_v27 = vmul.f32 0.6931472, %v469_v19  ;;  %v312_v29 = vsel %vm276_vm1, %v264_v50, %v301_v26 }
 0x1be   :  { %v310_v30 = vsel %vm309_vm2, %v307_v28, %v304_v27 }
 0x1bf   :  { %v313_v32 = vsel %vm277_vm3, %v269_v7, %v310_v30 }
 0x1c0   :  { %315 = vxpose.xlu1.b32.cont [2/3] (short) %v312_v29, 128 }
 0x1c4   :  { %316 = vxpose.xlu1.b32.end [3/3] (short) %v313_v32, 128 }
 0x238   :  { %v330_v33 = vpop.trf.xlu1 }
 0x239   :  { %347 = vst.msk [vmem:[#allocation5] sm:$0xff] %vm346_vm4, %v330_v33 }
 0x23c   :  { %v331_v34 = vpop.trf.xlu1 }
 0x23d   :  { %348 = vst.msk [vmem:[#allocation5 + $0x8] sm:$0xff] %vm346_vm4, %v331_v34 }
 0x240   :  { %v332_v35 = vpop.trf.xlu1 }
 0x241   :  { %349 = vst.msk [vmem:[#allocation5 + $0x10] sm:$0xff] %vm346_vm4, %v332_v35 }
 0x244   :  { %v333_v36 = vpop.trf.xlu1 }
 0x245   :  { %350 = vst.msk [vmem:[#allocation5 + $0x18] sm:$0xff] %vm346_vm4, %v333_v36 }
 0x248   :  { %v334_v31 = vpop.trf.xlu1 }
 0x249   :  { %351 = vst.msk [vmem:[#allocation5 + $0x20] sm:$0xff] %vm346_vm4, %v334_v31 }
 0x24c   :  { %v335_v37 = vpop.trf.xlu1 }
 0x24d   :  { %352 = vst.msk [vmem:[#allocation5 + $0x28] sm:$0xff] %vm346_vm4, %v335_v37 }
 0x250   :  { %v336_v38 = vpop.trf.xlu1 }
 0x251   :  { %353 = vst.msk [vmem:[#allocation5 + $0x30] sm:$0xff] %vm346_vm4, %v336_v38 }
 0x254   :  { %v337_v39 = vpop.trf.xlu1 }
 0x255   :  { %354 = vst.msk [vmem:[#allocation5 + $0x38] sm:$0xff] %vm346_vm4, %v337_v39 }
 0x258   :  { %v338_v40 = vpop.trf.xlu1 }
 0x259   :  { %355 = vst.msk [vmem:[#allocation5 + $0x40] sm:$0xff] %vm346_vm4, %v338_v40 }
 0x25c   :  { %v339_v25 = vpop.trf.xlu1 }
 0x25d   :  { %356 = vst.msk [vmem:[#allocation5 + $0x48] sm:$0xff] %vm346_vm4, %v339_v25 }
 0x260   :  { %v340_v41 = vpop.trf.xlu1 }
 0x261   :  { %357 = vst.msk [vmem:[#allocation5 + $0x50] sm:$0xff] %vm346_vm4, %v340_v41 }
 0x264   :  { %v341_v42 = vpop.trf.xlu1 }
 0x265   :  { %358 = vst.msk [vmem:[#allocation5 + $0x58] sm:$0xff] %vm346_vm4, %v341_v42 }
 0x268   :  { %v342_v23 = vpop.trf.xlu1 }
 0x269   :  { %359 = vst.msk [vmem:[#allocation5 + $0x60] sm:$0xff] %vm346_vm4, %v342_v23 }
 0x26c   :  { %v343_v43 = vpop.trf.xlu1 }
 0x26d   :  { %360 = vst.msk [vmem:[#allocation5 + $0x68] sm:$0xff] %vm346_vm4, %v343_v43 }
 0x270   :  { %v344_v44 = vpop.trf.xlu1 }
 0x271   :  { %361 = vst.msk [vmem:[#allocation5 + $0x70] sm:$0xff] %vm346_vm4, %v344_v44 }
 0x274   :  { %v345_v22 = vpop.trf.xlu1 }
 0x275   :  { %362 = vst.msk [vmem:[#allocation5 + $0x78] sm:$0xff] %vm346_vm4, %v345_v22 }
 0x276   :  { %367 = vsyncadd [#allocation4], 1792  ;;  %s520_s1 = smov [#allocation5]  }
 0x277   :  { %s368_s30 = sshll.u32 %s520_s1, 4  ;;  %s369_s30 = int_to_ptr.vmem [resolvable:$true] %s368_s30 }
 0x278   :  { %s490_s4 = scalar_lea.vmem %s369_s30, 256  ;;  %s494_s5 = scalar_lea.vmem %s369_s30, 2048 }
 0x279   :  { %p491_p5 = scmp.ne.s32.totalorder %s369_s30, %s490_s4  ;;  %p495_p6 = scmp.lt.s32.totalorder %s369_s30, %s369_s30 }
 0x27a   :  { %p496_p7 = scmp.lt.s32.totalorder %s494_s5, %s490_s4 }
 0x27c   :  { %p497_p8 = por %p496_p7, %p495_p6 }
 0x27e   :  { %p498_p9 = pnand %p497_p8, %p491_p5 }
 0x280   :  { %501 = shalt.err (!%p498_p9)
}
 0x281   :  { %374 = dma.vmem_to_hbm [thread:$0]  %s369_s30, 256, %s682_s3, [#allocation4], %s515_s16, %s515_s16, %s516_s17  }
 0x282   :  { %512 = dma.done.wait [#allocation4], 2048  }
 0x283   :  { %513 = vsyncadd [#allocation4], 4294965248 }
 0x284   :  { %378 = vsyncpa [#allocation3], 1 }
 0x285   :  { %379 = vsyncpa [#allocation4], 1 }

</bundles_post_ra>
